<compile_context>
chip_gen: v6e
topology: v6e:2x2x1
jax: 0.10.0
libtpu: 0.0.40
codegen_flags: <defaults>
</compile_context>

<pallas_src>
import jax
import jax.numpy as jnp
from jax.experimental import pallas as pl
from jax.experimental.pallas import tpu as pltpu


# ----------------------------------------------------------------------------
# Kernel: one grid step == one RNN timestep. Weights resident, hidden carried
# in the resident hidden-output block.
# ----------------------------------------------------------------------------
def rnn_seq_kernel(x_ref,      # (1, Bp, Ip)   current timestep input
                   h0_ref,     # (Bp, Hp)      initial hidden (resident)
                   wxh_ref,    # (Ip+Hp, Hp)   fused [wih; whh] (resident)
                   bh_ref,     # (1, Hp)       fused bih + bhh (resident)
                   who_ref,    # (Hp, Op)      h2o weight (resident)
                   bo_ref,     # (1, Op)       h2o bias (-1e30 in padded cols)
                   out_ref,    # (1, Bp, Op)   log-probs for this timestep
                   h_ref):     # (Bp, Hp)      carried hidden (resident output)
    t = pl.program_id(0)

    @pl.when(t == 0)
    def _():
        h_ref[...] = h0_ref[...]

    x = x_ref[0]                       # (Bp, Ip)
    h = h_ref[...]                     # (Bp, Hp)
    xh = jnp.concatenate([x, h], axis=1)   # (Bp, Ip+Hp), lane-tile aligned

    # hidden = tanh([x|h] @ W_xh + b_h)   (single MXU pass, fused bias)
    h_new = jnp.tanh(
        jnp.dot(xh, wxh_ref[...], preferred_element_type=jnp.float32)
        + bh_ref[...]
    )
    h_ref[...] = h_new                 # carry to next grid step (VMEM only)

    # output = log_softmax(hidden @ W_ho + b_o); padded cols have bias -1e30
    logits = (jnp.dot(h_new, who_ref[...], preferred_element_type=jnp.float32)
              + bo_ref[...])
    m = jnp.max(logits, axis=1, keepdims=True)
    shifted = logits - m
    lse = jnp.log(jnp.sum(jnp.exp(shifted), axis=1, keepdims=True))
    out_ref[0] = (shifted - lse).astype(out_ref.dtype)


# ----------------------------------------------------------------------------
# Host-side helpers
# ----------------------------------------------------------------------------
def _round_up(n, m):
    return ((n + m - 1) // m) * m


def _pad_to(a, shape):
    return jnp.pad(a, [(0, s - d) for d, s in zip(a.shape, shape)])


def init_params(key, input_size, hidden_size, output_size):
    """nn.Linear-like init. Weights stored as [in, out] (transposed vs torch)."""
    ks = jax.random.split(key, 6)

    def lin(kw, kb, fan_in, fan_out):
        bound = 1.0 / jnp.sqrt(fan_in)
        w = jax.random.uniform(kw, (fan_in, fan_out), jnp.float32, -bound, bound)
        b = jax.random.uniform(kb, (1, fan_out), jnp.float32, -bound, bound)
        return w, b

    wih, bih = lin(ks[0], ks[1], input_size, hidden_size)
    whh, bhh = lin(ks[2], ks[3], hidden_size, hidden_size)
    who, bho = lin(ks[4], ks[5], hidden_size, output_size)
    return wih, bih, whh, bhh, who, bho


def pack_params(params, input_size, hidden_size, output_size):
    """Fuse i2h/h2h and pad all feature dims to lane width (128)."""
    wih, bih, whh, bhh, who, bho = params
    Ip = _round_up(input_size, 128)
    Hp = _round_up(hidden_size, 128)
    Op = _round_up(output_size, 128)

    wxh = jnp.zeros((Ip + Hp, Hp), jnp.float32)
    wxh = wxh.at[:input_size, :hidden_size].set(wih)
    wxh = wxh.at[Ip:Ip + hidden_size, :hidden_size].set(whh)
    bh = jnp.zeros((1, Hp), jnp.float32).at[:, :hidden_size].set(bih + bhh)

    w_ho = jnp.zeros((Hp, Op), jnp.float32).at[:hidden_size, :output_size].set(who)
    # Huge negative bias in padded logit columns -> exp() underflows to 0,
    # so the padded lanes never perturb max / logsumexp.
    b_o = jnp.full((1, Op), -1e30, jnp.float32).at[:, :output_size].set(bho)

    return (wxh, bh, w_ho, b_o), (Ip, Hp, Op)


def rnn_sequence(xs, h0, packed_params, input_size, hidden_size, output_size):
    """Run the RNN over a whole sequence in one pallas_call.

    xs: [T, B, I], h0: [B, H] -> (log_probs [T, B, O], h_final [B, H]).
    """
    wxh, bh, w_ho, b_o = packed_params
    T, B, _ = xs.shape
    Kp, Hp = wxh.shape
    Op = w_ho.shape[1]
    Ip = Kp - Hp
    Bp = _round_up(max(B, 8), 8)

    xs_p = _pad_to(xs.astype(jnp.float32), (T, Bp, Ip))
    h0_p = _pad_to(h0.astype(jnp.float32), (Bp, Hp))

    flops = int(T * (2 * Bp * Kp * Hp + 2 * Bp * Hp * Op))
    transcendentals = int(T * Bp * (Hp + Op))
    bytes_accessed = int(4 * (xs_p.size + h0_p.size + wxh.size + bh.size
                              + w_ho.size + b_o.size + T * Bp * Op + Bp * Hp))

    out_p, hN_p = pl.pallas_call(
        rnn_seq_kernel,
        out_shape=(
            jax.ShapeDtypeStruct((T, Bp, Op), jnp.float32),
            jax.ShapeDtypeStruct((Bp, Hp), jnp.float32),
        ),
        grid_spec=pltpu.PrefetchScalarGridSpec(
            num_scalar_prefetch=0,
            grid=(T,),
            in_specs=[
                pl.BlockSpec((1, Bp, Ip), lambda t: (t, 0, 0)),   # x[t]
                pl.BlockSpec((Bp, Hp), lambda t: (0, 0)),         # h0 (resident)
                pl.BlockSpec((Kp, Hp), lambda t: (0, 0)),         # W_xh (resident)
                pl.BlockSpec((1, Hp), lambda t: (0, 0)),          # b_h  (resident)
                pl.BlockSpec((Hp, Op), lambda t: (0, 0)),         # W_ho (resident)
                pl.BlockSpec((1, Op), lambda t: (0, 0)),          # b_o  (resident)
            ],
            out_specs=(
                pl.BlockSpec((1, Bp, Op), lambda t: (t, 0, 0)),   # log-probs
                pl.BlockSpec((Bp, Hp), lambda t: (0, 0)),         # carried hidden
            ),
        ),
        compiler_params=pltpu.CompilerParams(
            dimension_semantics=("arbitrary",),   # time recurrence is sequential
        ),
        cost_estimate=pl.CostEstimate(
            flops=flops,
            transcendentals=transcendentals,
            bytes_accessed=bytes_accessed,
        ),
    )(xs_p, h0_p, wxh, bh, w_ho, b_o)

    return out_p[:, :B, :output_size], hN_p[:B, :hidden_size]


def rnn_forward(x, h, packed_params, input_size, hidden_size, output_size):
    """Single RNN step (matches RNN.forward(input, hidden))."""
    out, h_new = rnn_sequence(x[None], h, packed_params,
                              input_size, hidden_size, output_size)
    return out[0], h_new


# ----------------------------------------------------------------------------
# Demo / correctness check
# ----------------------------------------------------------------------------
if __name__ == "__main__":
    key = jax.random.PRNGKey(0)
    k_x, k_p = jax.random.split(key, 2)

    batch = 2
    seq_len = 8
    input_size = 16
    hidden_size = 32
    output_size = 8

    xs = jax.random.normal(k_x, (seq_len, batch, input_size), jnp.float32)
    h0 = jnp.zeros((batch, hidden_size), jnp.float32)   # initHidden (per batch row)

    params = init_params(k_p, input_size, hidden_size, output_size)
    packed, _ = pack_params(params, input_size, hidden_size, output_size)

    log_probs, h_final = rnn_sequence(xs, h0, packed,
                                      input_size, hidden_size, output_size)
    jax.block_until_ready((log_probs, h_final))

    # Pure-JAX reference: step the original (unfused) formulation.
    wih, bih, whh, bhh, who, bho = params
    h_ref = h0
    outs_ref = []
    for t in range(seq_len):
        h_ref = jnp.tanh(xs[t] @ wih + bih + h_ref @ whh + bhh)
        logits = h_ref @ who + bho
        lp = logits - jax.scipy.special.logsumexp(logits, axis=1, keepdims=True)
        outs_ref.append(lp)
    outs_ref = jnp.stack(outs_ref)

    assert jnp.allclose(h_final, h_ref, atol=1e-4), "hidden mismatch"
    assert jnp.allclose(log_probs, outs_ref, atol=1e-4), "log_softmax mismatch"

    # Single-step path (mirrors the module's forward signature) also works.
    lp1, h1 = rnn_forward(xs[0], h0, packed, input_size, hidden_size, output_size)
    jax.block_until_ready((lp1, h1))
    assert jnp.allclose(lp1, outs_ref[0], atol=1e-4), "single-step mismatch"

    print("KERNEL_OK")
</pallas_src>

<mosaic_0001>
module attributes {stable_mosaic.version = 11 : i64} {
  func.func @rnn_seq_kernel(%arg0: i32, %arg1: memref<1x8x128xf32, #tpu.memory_space<vmem>>, %arg2: memref<8x128xf32, #tpu.memory_space<vmem>>, %arg3: memref<256x128xf32, #tpu.memory_space<vmem>>, %arg4: memref<1x128xf32, #tpu.memory_space<vmem>>, %arg5: memref<128x128xf32, #tpu.memory_space<vmem>>, %arg6: memref<1x128xf32, #tpu.memory_space<vmem>>, %arg7: memref<1x8x128xf32, #tpu.memory_space<vmem>>, %arg8: memref<8x128xf32, #tpu.memory_space<vmem>>) attributes {dimension_semantics = [#tpu.dimension_semantics<arbitrary>], iteration_bounds = array<i64: 8>, scalar_prefetch = 0 : i64, scratch_operands = 0 : i64, tpu.core_type = #tpu.core_type<tc>, window_params = [{transform_indices = @transform_0, window_bounds = array<i64: 1, 8, 128>}, {pipeline_mode = #tpu.pipeline_mode<synchronous>, transform_indices = @transform_1, window_bounds = array<i64: 8, 128>}, {pipeline_mode = #tpu.pipeline_mode<synchronous>, transform_indices = @transform_2, window_bounds = array<i64: 256, 128>}, {pipeline_mode = #tpu.pipeline_mode<synchronous>, transform_indices = @transform_3, window_bounds = array<i64: 1, 128>}, {pipeline_mode = #tpu.pipeline_mode<synchronous>, transform_indices = @transform_4, window_bounds = array<i64: 128, 128>}, {pipeline_mode = #tpu.pipeline_mode<synchronous>, transform_indices = @transform_5, window_bounds = array<i64: 1, 128>}, {transform_indices = @transform_6, window_bounds = array<i64: 1, 8, 128>}, {pipeline_mode = #tpu.pipeline_mode<synchronous>, transform_indices = @transform_7, window_bounds = array<i64: 8, 128>}]} {
    %c0_i32 = arith.constant 0 : i32
    %0 = arith.cmpi eq, %arg0, %c0_i32 : i32
    %1 = arith.extui %0 : i1 to i32
    %c0_i32_0 = arith.constant 0 : i32
    %2 = arith.cmpi ne, %1, %c0_i32_0 : i32
    scf.if %2 {
      %c0_21 = arith.constant 0 : index
      %c0_22 = arith.constant 0 : index
      %32 = vector.load %arg2[%c0_21, %c0_22] : memref<8x128xf32, #tpu.memory_space<vmem>>, vector<8x128xf32>
      %c0_23 = arith.constant 0 : index
      %c0_24 = arith.constant 0 : index
      %33 = vector.load %arg8[%c0_23, %c0_24] : memref<8x128xf32, #tpu.memory_space<vmem>>, vector<8x128xf32>
      tpu.vector_store %arg8[%c0_23, %c0_24], %32 {strides = array<i32>} : memref<8x128xf32, #tpu.memory_space<vmem>>, vector<8x128xf32>,
    } else {
    }
    %c0 = arith.constant 0 : index
    %c0_1 = arith.constant 0 : index
    %c0_2 = arith.constant 0 : index
    %3 = vector.load %arg1[%c0, %c0_1, %c0_2] : memref<1x8x128xf32, #tpu.memory_space<vmem>>, vector<1x8x128xf32>
    %4 = vector.shape_cast %3 : vector<1x8x128xf32> to vector<8x128xf32>
    %c0_3 = arith.constant 0 : index
    %c0_4 = arith.constant 0 : index
    %5 = vector.load %arg8[%c0_3, %c0_4] : memref<8x128xf32, #tpu.memory_space<vmem>>, vector<8x128xf32>
    %6 = tpu.concatenate %4, %5 in 1 : vector<8x128xf32>, vector<8x128xf32> -> vector<8x256xf32>
    %c0_5 = arith.constant 0 : index
    %c0_6 = arith.constant 0 : index
    %7 = vector.load %arg3[%c0_5, %c0_6] : memref<256x128xf32, #tpu.memory_space<vmem>>, vector<256x128xf32>
    %cst = arith.constant dense<0.000000e+00> : vector<8x128xf32>
    %8 = tpu.matmul %6, %7, %cst {dimension_numbers = #tpu.dot_dimension_numbers<[1], [0], [0], [1], [0, 0, 1, 1], [], []>} : vector<8x256xf32>, vector<256x128xf32>, vector<8x128xf32> -> vector<8x128xf32>
    %c0_7 = arith.constant 0 : index
    %c0_8 = arith.constant 0 : index
    %9 = vector.load %arg4[%c0_7, %c0_8] : memref<1x128xf32, #tpu.memory_space<vmem>>, vector<1x128xf32>
    %10 = vector.broadcast %9 : vector<1x128xf32> to vector<8x128xf32>
    %11 = arith.addf %8, %10 : vector<8x128xf32>
    %12 = math.tanh %11 : vector<8x128xf32>
    %c0_9 = arith.constant 0 : index
    %c0_10 = arith.constant 0 : index
    %13 = vector.load %arg8[%c0_9, %c0_10] : memref<8x128xf32, #tpu.memory_space<vmem>>, vector<8x128xf32>
    tpu.vector_store %arg8[%c0_9, %c0_10], %12 {strides = array<i32>} : memref<8x128xf32, #tpu.memory_space<vmem>>, vector<8x128xf32>,
    %c0_11 = arith.constant 0 : index
    %c0_12 = arith.constant 0 : index
    %14 = vector.load %arg5[%c0_11, %c0_12] : memref<128x128xf32, #tpu.memory_space<vmem>>, vector<128x128xf32>
    %cst_13 = arith.constant dense<0.000000e+00> : vector<8x128xf32>
    %15 = tpu.matmul %12, %14, %cst_13 {dimension_numbers = #tpu.dot_dimension_numbers<[1], [0], [0], [1], [0, 0, 1, 1], [], []>} : vector<8x128xf32>, vector<128x128xf32>, vector<8x128xf32> -> vector<8x128xf32>
    %c0_14 = arith.constant 0 : index
    %c0_15 = arith.constant 0 : index
    %16 = vector.load %arg6[%c0_14, %c0_15] : memref<1x128xf32, #tpu.memory_space<vmem>>, vector<1x128xf32>
    %17 = vector.broadcast %16 : vector<1x128xf32> to vector<8x128xf32>
    %18 = arith.addf %15, %17 : vector<8x128xf32>
    %cst_16 = arith.constant dense<0xFF800000> : vector<8xf32>
    %19 = vector.multi_reduction <maximumf>, %18, %cst_16 [1] : vector<8x128xf32> to vector<8xf32>
    %20 = vector.shape_cast %19 : vector<8xf32> to vector<8x1xf32>
    %21 = vector.broadcast %20 : vector<8x1xf32> to vector<8x128xf32>
    %22 = arith.subf %18, %21 : vector<8x128xf32>
    %23 = math.exp %22 : vector<8x128xf32>
    %cst_17 = arith.constant dense<0.000000e+00> : vector<8xf32>
    %24 = vector.multi_reduction <add>, %23, %cst_17 [1] : vector<8x128xf32> to vector<8xf32>
    %25 = vector.shape_cast %24 : vector<8xf32> to vector<8x1xf32>
    %26 = math.log %25 : vector<8x1xf32>
    %27 = vector.broadcast %26 : vector<8x1xf32> to vector<8x128xf32>
    %28 = arith.subf %22, %27 : vector<8x128xf32>
    %c0_18 = arith.constant 0 : index
    %c0_19 = arith.constant 0 : index
    %c0_20 = arith.constant 0 : index
    %29 = vector.load %arg7[%c0_18, %c0_19, %c0_20] : memref<1x8x128xf32, #tpu.memory_space<vmem>>, vector<1x8x128xf32>
    %30 = vector.shape_cast %29 : vector<1x8x128xf32> to vector<8x128xf32>
    %31 = vector.shape_cast %28 : vector<8x128xf32> to vector<1x8x128xf32>
    tpu.vector_store %arg7[%c0_18, %c0_19, %c0_20], %31 {strides = array<i32>} : memref<1x8x128xf32, #tpu.memory_space<vmem>>, vector<1x8x128xf32>,
    return
  }
  func.func @transform_0(%arg0: i32) -> (i32, i32, i32) {
    %c0_i32 = arith.constant 0 : i32
    %c0_i32_0 = arith.constant 0 : i32
    %c0_i32_1 = arith.constant 0 : i32
    return %arg0, %c0_i32, %c0_i32_0 : i32, i32, i32
  }
  func.func @transform_1(%arg0: i32) -> (i32, i32) {
    %c0_i32 = arith.constant 0 : i32
    %c0_i32_0 = arith.constant 0 : i32
    %c0_i32_1 = arith.constant 0 : i32
    return %c0_i32, %c0_i32_0 : i32, i32
  }
  func.func @transform_2(%arg0: i32) -> (i32, i32) {
    %c0_i32 = arith.constant 0 : i32
    %c0_i32_0 = arith.constant 0 : i32
    %c0_i32_1 = arith.constant 0 : i32
    return %c0_i32, %c0_i32_0 : i32, i32
  }
  func.func @transform_3(%arg0: i32) -> (i32, i32) {
    %c0_i32 = arith.constant 0 : i32
    %c0_i32_0 = arith.constant 0 : i32
    %c0_i32_1 = arith.constant 0 : i32
    return %c0_i32, %c0_i32_0 : i32, i32
  }
  func.func @transform_4(%arg0: i32) -> (i32, i32) {
    %c0_i32 = arith.constant 0 : i32
    %c0_i32_0 = arith.constant 0 : i32
    %c0_i32_1 = arith.constant 0 : i32
    return %c0_i32, %c0_i32_0 : i32, i32
  }
  func.func @transform_5(%arg0: i32) -> (i32, i32) {
    %c0_i32 = arith.constant 0 : i32
    %c0_i32_0 = arith.constant 0 : i32
    %c0_i32_1 = arith.constant 0 : i32
    return %c0_i32, %c0_i32_0 : i32, i32
  }
  func.func @transform_6(%arg0: i32) -> (i32, i32, i32) {
    %c0_i32 = arith.constant 0 : i32
    %c0_i32_0 = arith.constant 0 : i32
    %c0_i32_1 = arith.constant 0 : i32
    return %arg0, %c0_i32, %c0_i32_0 : i32, i32, i32
  }
  func.func @transform_7(%arg0: i32) -> (i32, i32) {
    %c0_i32 = arith.constant 0 : i32
    %c0_i32_0 = arith.constant 0 : i32
    %c0_i32_1 = arith.constant 0 : i32
    return %c0_i32, %c0_i32_0 : i32, i32
  }
}

</mosaic_0001>

<bundles_post_ra>
// kernel: tpu_custom_call.1
= control target key start
LH: loop header
LB: loop body
LE: loop exit
PB: predicated region body
PF: predicated region fallthrough
CT: control target
= control target key end

     0   :  { %s1374_s0 = inlined_call_operand.hbm [shape: f32[8,8,128], index: 0, kind: input, shape index: {}]   ;;  %s1375_s1 = inlined_call_operand.hbm [shape: f32[8,128], index: 1, kind: input, shape index: {}]   ;;  %s1376_s2 = inlined_call_operand.hbm [shape: f32[256,128], index: 2, kind: input, shape index: {}]   ;;  %s1377_s3 = inlined_call_operand.vmem [shape: f32[1,128], index: 3, kind: input, shape index: {}]   ;;  %s1378_s4 = inlined_call_operand.hbm [shape: f32[128,128], index: 4, kind: input, shape index: {}]   ;;  %s1379_s5 = inlined_call_operand.vmem [shape: f32[1,128], index: 5, kind: input, shape index: {}]   ;;  %s1380_s6 = inlined_call_operand.hbm [shape: f32[8,8,128], index: 6, kind: output, shape index: {0}]   ;;  %s1381_s7 = inlined_call_operand.hbm [shape: f32[8,128], index: 7, kind: output, shape index: {1}]  }
   0x1   :  { %1386 = sst [smem:[#allocation18_spill]] %s1375_s1 }
   0x2   :  { %1387 = sst [smem:[#allocation19_spill]] %s1376_s2 }
   0x3   :  { %13 = vsyncpa [#allocation3], 0 }
   0x4   :  { %15 = vsyncpa [#allocation3 + $0x1], 0 }
   0x5   :  { %16 = vsyncpa [#allocation6], 0 }
   0x6   :  { %17 = vsyncpa [#allocation9], 0 }
   0x7   :  { %18 = vsyncpa [#allocation4], 0 }
   0x8   :  { %20 = vsyncpa [#allocation4 + $0x1], 0 }
   0x9   :  { %21 = vsyncpa [#allocation12], 0  ;;  %s1155_s24 = smov 0   ;;  %s1157_s25 = smov 0  }
   0xa   :  { %s1159_s26 = smov 0   ;;  %s1161_s27 = smov 0  }
   0xb LB: > { %s1176_s28 = sadd.s32 4294967295, %s1103_s27   ;;  %s693_s29 = sadd.s32 4294967294, %s1103_s27   ;;  %s1103_s27 = sphi %s1161_s27, %s1413_s27   ;;  %s1099_s26 = sphi %s1159_s26, %s1412_s26   ;;  %s1095_s25 = sphi %s1157_s25, %s1411_s25   ;;  %s1091_s24 = sphi %s1155_s24, %s1410_s24  }
   0xc   : > { %p47_p0 = scmp.ne.s32.totalorder %s1095_s25, %s1091_s24  ;;  %p1382_p1 = scmp.eq.s32.totalorder %s1176_s28, 0 }
   0xd   : > { %p182_p3 = scmp.eq.s32.totalorder %s693_s29, 7  ;;  %p694_p5 = scmp.ge.s32.totalorder %s1103_s27, 1 }
   0xe   : > { %p1185_p4 = por %p1382_p1, %p47_p0  ;;  %p210_p7 = scmp.lt.s32.totalorder %s1103_s27, 9 }
   0xf   : > { %p1190_p6 = por %p182_p3, %p47_p0  ;;  %s1105_s10 = smov [#allocation5]  }
  0x10   : > { %s1388_s30 = scalar_select %p1185_p4, 1, 0 }
  0x11   : > { %s1389_s8 = scalar_select %p1190_p6, 1, 0 }
  0x12   : > { %p1196_p9 = pnand %p694_p5, %p210_p7  ;;  %s223_s11 = sshll.u32 %s1105_s10, 4  ;;  %s224_s11 = int_to_ptr.vmem [resolvable:$true] %s223_s11 }
  0x13   : > { %s1106_s12 = smov [#allocation7]   ;;  %s1107_s15 = smov [#allocation8]  }
  0x14   : > { %s1390_s9 = scalar_select %p1196_p9, 1, 0 }
  0x15   : > { %p823_p10 = pneg %p1196_p9  ;;  %s233_s13 = sshll.u32 %s1106_s12, 4  ;;  %s234_s13 = int_to_ptr.vmem [resolvable:$true] %s233_s13 }
  0x16   : > { %s249_s16 = sshll.u32 %s1107_s15, 4  ;;  %s908_s17 = scalar_lea.vmem %s224_s11, 128  ;;  %s250_s16 = int_to_ptr.vmem [resolvable:$true] %s249_s16 }
  0x17   : > { %p1204_p11 = pnand %p823_p10, %p1382_p1  ;;  %p909_p13 = scmp.ne.s32.totalorder %s224_s11, %s908_s17 }
  0x18   : > { %p916_p5 = scmp.lt.s32.totalorder %s224_s11, %s224_s11  ;;  %p917_p7 = scmp.lt.s32.totalorder %s908_s17, %s908_s17 }
  0x19   : > { %p899_p12 = pneg %p1204_p11 }
  0x1a   : > { %p918_p8 = por %p917_p7, %p916_p5 }
  0x1b   : > { %p911_p0 = pnand %p909_p13, %p899_p12 }
  0x1d   : > { %p912_p3 = pneg %p911_p0 }
  0x1f   : > { %p919_p10 = pnand %p918_p8, %p912_p3 }
  0x21   : > { %922 = shalt.err (!%p919_p10)
}
  0x22   : > { %s1392_s1 = sld [smem:[#allocation18_spill]]  ;;  %s934_s20 = scalar_lea.vmem %s234_s13, 4096 }
  0x23   : > { %p935_p1 = scmp.ne.s32.totalorder %s234_s13, %s934_s20  ;;  %p942_p13 = scmp.lt.s32.totalorder %s234_s13, %s234_s13 }
  0x24   : > { %p943_p0 = scmp.lt.s32.totalorder %s934_s20, %s934_s20 }
  0x25   : > { %p937_p2 = pnand %p935_p1, %p899_p12 }
  0x26   : > { %p944_p4 = por %p943_p0, %p942_p13 }
  0x27   : > { %p938_p6 = pneg %p937_p2 }
  0x28   : > { %826 = dma.hbm_to_vmem [thread:$0]  (!%p1204_p11), %s1392_s1, 128, %s224_s11, [#allocation6]  }
  0x29   : > { %p945_p9 = pnand %p944_p4, %p938_p6 }
  0x2b   : > { %948 = shalt.err (!%p945_p9)
}
  0x2c   : > { %s1108_s21 = smov 128   ;;  %s1109_s22 = smov 8  }
  0x2d   : > { %s1393_s2 = sld [smem:[#allocation19_spill]]  ;;  %s960_s10 = scalar_lea.vmem %s250_s16, 2048 }
  0x2e   : > { %p961_p8 = scmp.ne.s32.totalorder %s250_s16, %s960_s10  ;;  %p968_p3 = scmp.lt.s32.totalorder %s250_s16, %s250_s16 }
  0x2f   : > { %p969_p5 = scmp.lt.s32.totalorder %s960_s10, %s960_s10 }
  0x30   : > { %p963_p1 = pnand %p961_p8, %p899_p12 }
  0x31   : > { %p970_p4 = por %p969_p5, %p968_p3 }
  0x32   : > { %p964_p2 = pneg %p963_p1 }
  0x33   : > { %829 = dma.hbm_to_vmem [thread:$0]  (!%p1204_p11), %s1393_s2, 4096, %s234_s13, [#allocation6], %s1108_s21, %s1108_s21, %s1109_s22  }
  0x34   : > { %p971_p6 = pnand %p970_p4, %p964_p2 }
  0x36   : > { %974 = shalt.err (!%p971_p6)
}
  0x37   : > { %832 = dma.hbm_to_vmem [thread:$0]  (!%p1204_p11), %s1378_s4, 2048, %s250_s16, [#allocation9], %s1108_s21, %s1108_s21, %s1109_s22  }
  0x38   : > { %s1235_s13 = sadd.s32 1, %s1103_s27   ;;  %s34_s14 = sadd.s32 1, %s1099_s26 }
  0x39   : > { %s31_s15 = ssub.s32 %s1103_s27, %s1235_s13  ;;  %p41_p12 = scmp.ne.s32.totalorder %s1099_s26, %s1095_s25 }
  0x3a   : > { %p32_p9 = scmp.eq.s32.totalorder %s31_s15, 0  ;;  %p42_p7 = scmp.eq.s32.totalorder %s1103_s27, 0 }
  0x3b   : > { %p844_p10 = scmp.lt.s32.totalorder %s1103_s27, 8  ;;  %p1394_p0 = scmp.eq.s32.totalorder %s1176_s28, 7 }
  0x3c   : > { %s1245_s17 = scalar_select %p32_p9, %s1099_s26, %s34_s14  }
  0x3d   : > { %p43_p13 = por %p42_p7, %p41_p12  ;;  %p1249_p8 = por %p1394_p0, %p41_p12 }
  0x3e   : > { %s266_s19 = sand.u32 1, %s1099_s26   ;;  %s700_s20 = sshll.u32 %s1103_s27, 7 }
  0x3f   : > { %s1395_s18 = scalar_select %p1249_p8, 1, 0 }
  0x40   : > { %s699_s16 = sshll.u32 %s266_s19, 3  ;;  %s1258_s23 = scalar_lea.hbm %s1374_s0, %s700_s20 }
  0x41   : > { %s270_s29 = scalar_lea.vmem [#allocation2], %s699_s16  ;;  %p1260_p11 = pnand %p844_p10, %p43_p13 }
  0x42   : > { %s277_s10 = sshll.u32 %s270_s29, 4  ;;  %s267_s12 = scalar_lea.sflag [#allocation3], %s266_s19  ;;  %s278_s10 = int_to_ptr.vmem [resolvable:$true] %s277_s10 }
  0x43   : > { %s975_s15 = scalar_lea.hbm %s1258_s23, 128  ;;  %p977_p2 = pneg %p1260_p11 }
  0x44   : > { %p976_p1 = scmp.ne.s32.totalorder %s1258_s23, %s975_s15  ;;  %s980_s21 = scalar_lea.hbm %s1374_s0, 1024 }
  0x45   : > { %p981_p4 = scmp.lt.s32.totalorder %s1258_s23, %s1374_s0  ;;  %p982_p6 = scmp.lt.s32.totalorder %s980_s21, %s975_s15 }
  0x46   : > { %p978_p3 = pnand %p977_p2, %p976_p1 }
  0x47   : > { %p983_p9 = por %p982_p6, %p981_p4 }
  0x48   : > { %p979_p5 = pneg %p978_p3 }
  0x4a   : > { %p984_p12 = pnand %p983_p9, %p979_p5 }
  0x4c   : > { %987 = shalt.err (!%p984_p12)
}
  0x4d   : > { %s988_s29 = scalar_lea.vmem %s278_s10, 128  ;;  %s1110_s19 = smov [#allocation2]  }
  0x4e   : > { %p989_p7 = scmp.ne.s32.totalorder %s278_s10, %s988_s29  ;;  %s993_s1 = sshll.u32 %s1110_s19, 4  ;;  %s994_s1 = int_to_ptr.vmem [resolvable:$false] %s993_s1 }
  0x4f   : > { %s995_s2 = scalar_lea.vmem %s994_s1, 256  ;;  %p996_p0 = scmp.lt.s32.totalorder %s278_s10, %s994_s1 }
  0x50   : > { %p991_p10 = pnand %p989_p7, %p977_p2  ;;  %p997_p1 = scmp.lt.s32.totalorder %s995_s2, %s988_s29 }
  0x52   : > { %p992_p13 = pneg %p991_p10  ;;  %p998_p3 = por %p997_p1, %p996_p0 }
  0x54   : > { %p999_p8 = pnand %p998_p3, %p992_p13 }
  0x56   : > { %1002 = shalt.err (!%p999_p8)
}
  0x57   : > { %836 = dma.hbm_to_vmem [thread:$0]  (!%p1260_p11), %s1258_s23, 128, %s278_s10, %s267_s12  }
  0x58   : > { %p1397_p5 = scmp.ne.s32.totalorder %s1390_s9, 0 }
  0x59   : > { %s1281_s15 = sand.u32 (!%p1397_p5), 1, %s1095_s25   ;;  %p1398_p2 = scmp.ne.s32.totalorder (!%p1397_p5), %s1388_s30, 0 }
  0x5a   : > { %286 = sbr.rel (%p1397_p5) target bundleno = 882 (0x372), region = 44  ;;  %s702_s14 = sshll.u32 (!%p1397_p5), %s1281_s15, 3 }
  0x5b   : > { %s289_s20 = scalar_lea.sflag (!%p1397_p5), [#allocation3], %s1281_s15  ;;  %s1285_s1 = scalar_lea.vmem (!%p1397_p5), [#allocation2], %s702_s14 }
  0x5f   : > { %1070 = dma.done.wait (%p1398_p2), %s289_s20, 128  }
  0x60   : > { %1072 = vsyncadd (%p1398_p2), %s289_s20, 4294967168  ;;  %p1399_p8 = scmp.eq.s32.totalorder %s1176_s28, 0 }
  0x62   : > { %1074 = dma.done.wait (%p1399_p8), [#allocation6], 4224   ;;  %p1400_p11 = pmov %p1399_p8 }
  0x63   : > { %p1401_p4 = pmov %p1399_p8 }
  0x64   : > { %1076 = vsyncadd (%p1400_p11), [#allocation6], 4294963072 }
  0x65   : > { %1078 = dma.done.wait (%p1401_p4), [#allocation9], 2048   ;;  %p1402_p6 = pmov %p1401_p4 }
  0x66   : > { %s1299_s2 = scalar_lea.vmem [#allocation10], %s702_s14  ;;  %p1403_p9 = scmp.ne.s32.totalorder %s1176_s28, 0 }
  0x67   : > { %1080 = vsyncadd (%p1402_p6), [#allocation9], 4294965248 }
  0x68   : > { %338 = sbr.rel (%p1403_p9) target bundleno = 111 (0x6f), region = 64 }
  0x6d   : > { %v339_v0 = vld [vmem:[#allocation5] sm:$0xff] }
  0x6e   : > { %340 = vst [vmem:[#allocation11] sm:$0xff] %v339_v0 }
  0x6f PF: > { %v374_v1 = vld [vmem:[#allocation7 + $0xf8] sm:$0xff]  ;;  %v373_v3 = vld [vmem:[#allocation7 + $0xf0] sm:$0xff]  ;;  %v1111_v5 = vmov 0.0   ;;  %v372_v6 = vld [vmem:[#allocation7 + $0xe8] sm:$0xff]  ;;  %vm1112_vm0 = vmmov 0   ;;  %s1113_s11 = smov [#allocation11]  }
  0x70   : > { %v358_v2 = vld [vmem:[#allocation7 + $0x78] sm:$0xff]  ;;  %716 = vmatprep.subr.mxu0 %v374_v1  ;;  %v357_v4 = vld [vmem:[#allocation7 + $0x70] sm:$0xff]  ;;  %768 = vmatprep.subr.mxu1 %v1111_v5  ;;  %v356_v7 = vld [vmem:[#allocation7 + $0x68] sm:$0xff]  ;;  %s583_s12 = sshll.u32 %s1113_s11, 4  ;;  %p1404_p7 = scmp.eq.s32.totalorder %s1176_s28, 7  ;;  %s584_s12 = int_to_ptr.vmem [resolvable:$true] %s583_s12 }
  0x71   : > { %717 = vmatpush3.msra.mxu0 %v358_v2  ;;  %v371_v8 = vld [vmem:[#allocation7 + $0xe0] sm:$0xff]  ;;  %v370_v10 = vld [vmem:[#allocation7 + $0xd8] sm:$0xff]  ;;  %v369_v12 = vld [vmem:[#allocation7 + $0xd0] sm:$0xff]  ;;  %800 = vmatprep.mubr.msk.f32.mxu1 %vm1112_vm0, %v1111_v5  ;;  %s1003_s21 = scalar_lea.vmem %s584_s12, 128  ;;  %p1010_p0 = scmp.lt.s32.totalorder %s584_s12, %s584_s12 }
  0x72   : > { %718 = vmatprep.subr.mxu0 %v373_v3  ;;  %v355_v9 = vld [vmem:[#allocation7 + $0x60] sm:$0xff]  ;;  %v354_v11 = vld [vmem:[#allocation7 + $0x58] sm:$0xff]  ;;  %v353_v13 = vld [vmem:[#allocation7 + $0x50] sm:$0xff]  ;;  %p1004_p12 = scmp.ne.s32.totalorder %s584_s12, %s1003_s21  ;;  %p1011_p1 = scmp.lt.s32.totalorder %s1003_s21, %s1003_s21 }
  0x73   : > { %719 = vmatpush3.msra.mxu0 %v357_v4  ;;  %v368_v14 = vld [vmem:[#allocation7 + $0xc8] sm:$0xff]  ;;  %v469_v17 = vld [vmem:[#allocation8 + $0x78] sm:$0xff]  ;;  %v468_v18 = vld [vmem:[#allocation8 + $0x70] sm:$0xff] }
  0x74   : > { %720 = vmatprep.subr.mxu0 %v372_v6  ;;  %v352_v16 = vld [vmem:[#allocation7 + $0x48] sm:$0xff]  ;;  %v367_v19 = vld [vmem:[#allocation7 + $0xc0] sm:$0xff]  ;;  %769 = vmatpush3.msra.mxu1 %v469_v17  ;;  %v366_v22 = vld [vmem:[#allocation7 + $0xb8] sm:$0xff]  ;;  %p1005_p10 = pnand %p1004_p12, %p1404_p7  ;;  %p1012_p3 = por %p1011_p1, %p1010_p0 }
  0x75   : > { %721 = vmatpush3.msra.mxu0 %v356_v7  ;;  %v342_v15 = vld [vmem:[#allocation11] sm:$0xff]  ;;  %v351_v20 = vld [vmem:[#allocation7 + $0x40] sm:$0xff]  ;;  %770 = vmatprep.subr.mxu1 %v1111_v5  ;;  %v467_v21 = vld [vmem:[#allocation8 + $0x68] sm:$0xff] }
  0x76   : > { %722 = vmatprep.subr.mxu0 %v371_v8  ;;  %446 = vmatprep.mubr.f32.mxu0 %v342_v15  ;;  %v350_v23 = vld [vmem:[#allocation7 + $0x38] sm:$0xff]  ;;  %v466_v24 = vld [vmem:[#allocation8 + $0x60] sm:$0xff]  ;;  %v365_v25 = vld [vmem:[#allocation7 + $0xb0] sm:$0xff]  ;;  %p1006_p13 = pneg %p1005_p10 }
  0x77   : > { %723 = vmatpush3.msra.mxu0 %v355_v9  ;;  %771 = vmatpush3.msra.mxu1 %v468_v18  ;;  %v349_v26 = vld [vmem:[#allocation7 + $0x30] sm:$0xff]  ;;  %v465_v27 = vld [vmem:[#allocation8 + $0x58] sm:$0xff]  ;;  %v364_v28 = vld [vmem:[#allocation7 + $0xa8] sm:$0xff] }
  0x78   : > { %724 = vmatprep.subr.mxu0 %v370_v10  ;;  %772 = vmatprep.subr.mxu1 %v1111_v5  ;;  %v348_v29 = vld [vmem:[#allocation7 + $0x28] sm:$0xff]  ;;  %v363_v30 = vld [vmem:[#allocation7 + $0xa0] sm:$0xff]  ;;  %v362_v32 = vld [vmem:[#allocation7 + $0x98] sm:$0xff]  ;;  %p1013_p5 = pnand %p1012_p3, %p1006_p13 }
  0x79   : > { %725 = vmatpush3.msra.mxu0 %v354_v11  ;;  %773 = vmatpush3.msra.mxu1 %v467_v21  ;;  %v347_v31 = vld [vmem:[#allocation7 + $0x20] sm:$0xff]  ;;  %v346_v33 = vld [vmem:[#allocation7 + $0x18] sm:$0xff]  ;;  %v361_v34 = vld [vmem:[#allocation7 + $0x90] sm:$0xff] }
  0x7a   : > { %726 = vmatprep.subr.mxu0 %v369_v12  ;;  %774 = vmatprep.subr.mxu1 %v1111_v5  ;;  %v345_v35 = vld [vmem:[#allocation7 + $0x10] sm:$0xff]  ;;  %v360_v36 = vld [vmem:[#allocation7 + $0x88] sm:$0xff]  ;;  %v359_v38 = vld [vmem:[#allocation7 + $0x80] sm:$0xff] }
  0x7b   : > { %727 = vmatpush3.msra.mxu0 %v353_v13  ;;  %775 = vmatpush3.msra.mxu1 %v466_v24  ;;  %v344_v37 = vld [vmem:[#allocation7 + $0x8] sm:$0xff]  ;;  %v343_v39 = vld [vmem:[#allocation7] sm:$0xff]  ;;  %v464_v41 = vld [vmem:[#allocation8 + $0x50] sm:$0xff] }
  0x7c   : > { %728 = vmatprep.subr.mxu0 %v368_v14  ;;  %776 = vmatprep.subr.mxu1 %v1111_v5  ;;  %v341_v40 = vld [vmem:[%s1285_s1] sm:$0xff]  ;;  %v462_v43 = vld [vmem:[#allocation8 + $0x40] sm:$0xff]  ;;  %v461_v44 = vld [vmem:[#allocation8 + $0x38] sm:$0xff] }
  0x7d   : > { %729 = vmatpush3.msra.mxu0 %v352_v16  ;;  %777 = vmatpush3.msra.mxu1 %v465_v27  ;;  %v463_v42 = vld [vmem:[#allocation8 + $0x48] sm:$0xff]  ;;  %v460_v45 = vld [vmem:[#allocation8 + $0x30] sm:$0xff]  ;;  %v458_v47 = vld [vmem:[#allocation8 + $0x20] sm:$0xff] }
  0x7e   : > { %730 = vmatprep.subr.mxu0 %v367_v19  ;;  %778 = vmatprep.subr.mxu1 %v1111_v5  ;;  %v459_v46 = vld [vmem:[#allocation8 + $0x28] sm:$0xff]  ;;  %v457_v48 = vld [vmem:[#allocation8 + $0x18] sm:$0xff]  ;;  %v456_v49 = vld [vmem:[#allocation8 + $0x10] sm:$0xff] }
  0x7f   : > { %731 = vmatpush3.msra.mxu0 %v351_v20  ;;  %779 = vmatpush3.msra.mxu1 %v464_v41  ;;  %v455_v50 = vld [vmem:[#allocation8 + $0x8] sm:$0xff]  ;;  %v454_v51 = vld [vmem:[#allocation8] sm:$0xff] }
  0x80   : > { %732 = vmatprep.subr.mxu0 %v366_v22  ;;  %780 = vmatprep.subr.mxu1 %v1111_v5  ;;  %v708_v53 = vld [vmem:[%s1377_s3] ss:$0 sm:$0xff] }
  0x81   : > { %733 = vmatpush3.msra.mxu0 %v350_v23  ;;  %781 = vmatpush3.msra.mxu1 %v463_v42  ;;  %v709_v58 = vld [vmem:[%s1379_s5] ss:$0 sm:$0xff] }
  0x82   : > { %734 = vmatprep.subr.mxu0 %v365_v25  ;;  %782 = vmatprep.subr.mxu1 %v1111_v5 }
  0x83   : > { %735 = vmatpush3.msra.mxu0 %v349_v26  ;;  %783 = vmatpush3.msra.mxu1 %v462_v43 }
  0x84   : > { %736 = vmatprep.subr.mxu0 %v364_v28  ;;  %784 = vmatprep.subr.mxu1 %v1111_v5 }
  0x85   : > { %737 = vmatpush3.msra.mxu0 %v348_v29  ;;  %785 = vmatpush3.msra.mxu1 %v461_v44 }
  0x86   : > { %738 = vmatprep.subr.mxu0 %v363_v30  ;;  %786 = vmatprep.subr.mxu1 %v1111_v5 }
  0x87   : > { %739 = vmatpush3.msra.mxu0 %v347_v31  ;;  %787 = vmatpush3.msra.mxu1 %v460_v45 }
  0x88   : > { %740 = vmatprep.subr.mxu0 %v362_v32  ;;  %788 = vmatprep.subr.mxu1 %v1111_v5 }
  0x89   : > { %741 = vmatpush3.msra.mxu0 %v346_v33  ;;  %789 = vmatpush3.msra.mxu1 %v459_v46 }
  0x8a   : > { %742 = vmatprep.subr.mxu0 %v361_v34  ;;  %790 = vmatprep.subr.mxu1 %v1111_v5 }
  0x8b   : > { %743 = vmatpush3.msra.mxu0 %v345_v35  ;;  %791 = vmatpush3.msra.mxu1 %v458_v47 }
  0x8c   : > { %744 = vmatprep.subr.mxu0 %v360_v36  ;;  %792 = vmatprep.subr.mxu1 %v1111_v5 }
  0x8d   : > { %745 = vmatpush3.msra.mxu0 %v344_v37  ;;  %793 = vmatpush3.msra.mxu1 %v457_v48 }
  0x8e   : > { %746 = vmatprep.subr.mxu0 %v359_v38  ;;  %794 = vmatprep.subr.mxu1 %v1111_v5 }
  0x8f   : > { %747 = vmatpush3.msra.mxu0 %v343_v39  ;;  %795 = vmatpush3.msra.mxu1 %v456_v49 }
  0x90   : > { %447 = vmatmul.mubr.f32.vlgmr.msra.gmra.mxu0 %v341_v40  ;;  %796 = vmatprep.subr.mxu1 %v1111_v5 }
  0x91   : > { %797 = vmatpush3.msra.mxu1 %v455_v50 }
  0x92   : > { %798 = vmatprep.subr.mxu1 %v1111_v5 }
  0x93   : > { %799 = vmatpush3.msra.mxu1 %v454_v51 }
 0x150   : > { %v748_v52 = vpop.f32.mrf.mxu0 }
 0x152   : > { %v749_v54 = vpop.f32.mrf.mxu0 }
 0x153   : > { %v750_v55 = vadd.f32 %v749_v54, %v748_v52 }
 0x155   : > { %v449_v56 = vadd.f32 %v750_v55, %v708_v53 }
 0x157   : > { %891 = vtanh.f32 %v449_v56 }
 0x164   : > { %v892_v57 = vpop.eup %891 }
 0x165   : > { %453 = vst [vmem:[#allocation11] sm:$0xff] %v892_v57  ;;  %801 = vmatmul.mubr.f32.vlgmr.msra.gmra.mxu1 %v892_v57 }
 0x225   : > { %v543_v59 = vpop.f32.mrf.mxu1 }
 0x226   : > { %v544_v60 = vadd.f32 %v709_v58, %v543_v59 }
 0x227   : > { %v802_v61 = vpop.f32.mrf.mxu1 }
 0x228   : > { %547 = vmax.xlane.f32.xlu0 %v544_v60 }
 0x2b1   : > { %v548_v62 = vpop.xlane.xlu0 %547 }
 0x2b2   : > { %v549_v63 = vsub.f32 %v544_v60, %v548_v62 }
 0x2b4   : > { %v550_v0 = vmul.f32 1.442695, %v549_v63 }
 0x2b6   : > { %893 = vpow2.f32 %v550_v0 }
 0x2c3   : > { %v894_v1 = vpop.eup %893 }
 0x2c4   : > { %552 = vadd.xlane.f32.xlu0 %v894_v1 }
 0x2c5   : > { %1016 = shalt.err (!%p1013_p5)
}
 0x2c6   : > { %p1405_p2 = pmov %p1404_p7  ;;  %s711_s29 = sshll.u32 %s1176_s28, 7 }
 0x2c7   : > { %s572_s19 = sshll.u32 %s1299_s2, 4  ;;  %s570_s1 = scalar_lea.hbm %s1380_s6, %s711_s29  ;;  %s573_s19 = int_to_ptr.vmem [resolvable:$true] %s572_s19 }
 0x2c8   : > { %819 = dma.vmem_to_hbm [thread:$0]  (%p1405_p2), %s584_s12, 128, %s1381_s7, [#allocation12]  }
 0x2c9   : > { %s559_s30 = scalar_lea.sflag [#allocation4], %s1281_s15  ;;  %s1027_s9 = scalar_lea.vmem %s573_s19, 128 }
 0x2ca   : > { %p1028_p8 = scmp.ne.s32.totalorder %s573_s19, %s1027_s9  ;;  %p1406_p11 = scmp.ne.s32.totalorder %s1395_s18, 0 }
 0x2cb   : > { %s1114_s23 = smov [#allocation10]  }
 0x2cc   : > { %p1029_p4 = pnand %p1028_p8, %p1406_p11  ;;  %s1031_s10 = sshll.u32 %s1114_s23, 4  ;;  %s1032_s10 = int_to_ptr.vmem [resolvable:$false] %s1031_s10 }
 0x2cd   : > { %s1033_s11 = scalar_lea.vmem %s1032_s10, 256  ;;  %p1034_p9 = scmp.lt.s32.totalorder %s573_s19, %s1032_s10 }
 0x2ce   : > { %p1030_p6 = pneg %p1029_p4  ;;  %p1035_p12 = scmp.lt.s32.totalorder %s1033_s11, %s1027_s9 }
 0x2d0   : > { %p1036_p7 = por %p1035_p12, %p1034_p9 }
 0x2d2   : > { %p1037_p10 = pnand %p1036_p7, %p1030_p6 }
 0x34d   : > { %v553_v2 = vpop.xlane.xlu0 %552 }
 0x34e   : > { %895 = vlog2.f32 %v553_v2 }
 0x35b   : > { %v896_v3 = vpop.eup %895 }
 0x35c   : > { %v555_v4 = vmul.f32 0.6931472, %v896_v3 }
 0x35e   : > { %v556_v5 = vsub.f32 %v549_v63, %v555_v4 }
 0x360   : > { %557 = vst [vmem:[%s1299_s2] sm:$0xff] %v556_v5 }
 0x361   : > { %1040 = shalt.err (!%p1037_p10)
}
 0x362   : > { %s1041_s12 = scalar_lea.hbm %s570_s1, 128  ;;  %s1045_s21 = scalar_lea.hbm %s1380_s6, 1024 }
 0x363   : > { %p1042_p13 = scmp.ne.s32.totalorder %s570_s1, %s1041_s12  ;;  %p1046_p3 = scmp.lt.s32.totalorder %s570_s1, %s1380_s6 }
 0x364   : > { %p1047_p5 = scmp.lt.s32.totalorder %s1045_s21, %s1041_s12 }
 0x365   : > { %p1043_p0 = pnand %p1042_p13, %p1406_p11 }
 0x366   : > { %p1048_p2 = por %p1047_p5, %p1046_p3 }
 0x367   : > { %p1044_p1 = pneg %p1043_p0 }
 0x369   : > { %p1049_p8 = pnand %p1048_p2, %p1044_p1 }
 0x36b   : > { %1052 = shalt.err (!%p1049_p8)
}
 0x36c   : > { %817 = dma.vmem_to_hbm [thread:$0]  (%p1406_p11), %s573_s19, 128, %s570_s1, %s559_s30  }
 0x36d   : > { %p1407_p4 = scmp.eq.s32.totalorder %s1176_s28, 7 }
 0x36f   : > { %1082 = dma.done.wait (%p1407_p4), [#allocation12], 128   ;;  %p1408_p6 = pmov %p1407_p4 }
 0x371   : > { %1084 = vsyncadd (%p1408_p6), [#allocation12], 4294967168 }
 0x372 PF: > { %p850_p9 = scmp.ge.s32.totalorder %s1103_s27, 2  ;;  %s599_s29 = sand.u32 1, %s1091_s24  }
 0x373   : > { %p1409_p12 = scmp.ne.s32.totalorder %s1389_s8, 0  ;;  %s600_s14 = scalar_lea.sflag [#allocation4], %s599_s29 }
 0x375   : > { %p838_p7 = pnand %p850_p9, %p1409_p12 }
 0x377   : > { %p839_p10 = pneg %p838_p7 }
 0x379   : > { %1086 = dma.done.wait (%p839_p10), %s600_s14, 128  }
 0x37a   : > { %1088 = vsyncadd (%p839_p10), %s600_s14, 4294967168  ;;  %p24_p11 = scmp.ge.s32.totalorder %s1235_s13, 10   ;;  %s1410_s24 = smov %s1095_s25 }
 0x37b   : > { %s1411_s25 = smov %s1099_s26  ;;  %s1412_s26 = smov %s1245_s17 }
 0x37c   : > { %s1413_s27 = smov %s1235_s13  ;;  %26 = sbr.rel (!%p24_p11) target bundleno = 11 (0xb), region = 113 }
 0x381   :  { %605 = vsyncpa [#allocation3], 1 }
 0x382   :  { %607 = vsyncpa [#allocation3 + $0x1], 1 }
 0x383   :  { %608 = vsyncpa [#allocation6], 1 }
 0x384   :  { %609 = vsyncpa [#allocation9], 1 }
 0x385   :  { %610 = vsyncpa [#allocation4], 1 }
 0x386   :  { %612 = vsyncpa [#allocation4 + $0x1], 1 }
 0x387   :  { %613 = vsyncpa [#allocation12], 1 }

</bundles_post_ra>
